<compile_context>
chip_gen: v5e
topology: v5e:2x2
jax: 0.10.0
libtpu: 0.0.40
codegen_flags: <defaults>
</compile_context>

<pallas_src>
import numpy as np
import jax
import jax.numpy as jnp
from jax.experimental import pallas as pl
from jax.experimental.pallas import tpu as pltpu


# --------------------------------------------------------------------------
# Wrapper-side (numpy, exact) weight precompute helpers
# --------------------------------------------------------------------------
def _upsample_matrix_align_corners(in_size: int, out_size: int) -> np.ndarray:
    """1-D bilinear upsample matrix M (out_size, in_size), align_corners=True."""
    m = np.zeros((out_size, in_size), np.float64)
    if in_size == 1:
        m[:, 0] = 1.0
        return m
    scale = (in_size - 1) / (out_size - 1)
    for i in range(out_size):
        src = i * scale
        i0 = min(int(np.floor(src)), in_size - 1)
        i1 = min(i0 + 1, in_size - 1)
        frac = src - i0
        m[i, i0] += 1.0 - frac
        m[i, i1] += frac
    return m


def _conv_tap_matrices(w, hi_size: int) -> np.ndarray:
    """Per-horizontal-tap structured matrices A[kw] (cout*Ho, cin*Hi) with
    A[kw][co*Ho+ho, ci*Hi+hi] = w[co,ci,hi-ho,kw] for 0 <= hi-ho < k, so a
    valid 2-D conv is  sum_kw (A[kw] @ act2d) @ S[kw]  (S = shifted identity)."""
    w = np.asarray(w, np.float64)
    cout, cin, k, _ = w.shape
    ho = hi_size - k + 1
    mats = np.zeros((k, cout, ho, cin, hi_size), np.float64)
    for kw in range(k):
        for kh in range(k):
            e = np.eye(ho, hi_size, k=kh)
            mats[kw] += w[:, :, kh, kw][:, None, :, None] * e[None, :, None, :]
    return mats.reshape(k, cout * ho, cin * hi_size)


def _tensorcores_per_chip() -> int:
    """Best-effort TensorCore count (v7x: 2, v5e/v6e: 1).  A wrong answer only
    changes how the batch is folded, never the result."""
    try:
        info = pltpu.get_tpu_info()
    except Exception:
        return 1
    for name in ("num_tensorcores", "tensorcores_per_chip", "num_cores",
                 "cores_per_chip", "core_count", "num_tensor_cores"):
        val = getattr(info, name, None)
        if isinstance(val, (int, np.integer)) and 1 <= int(val) <= 16:
            return int(val)
    return 1


# --------------------------------------------------------------------------
# Kernel
# --------------------------------------------------------------------------
def _expanding_block_kernel(x_ref, skip_ref, mcol_ref, a2_ref, s2_ref, b2_ref,
                            a3_ref, s3_ref, b3_ref, out_ref):
    f32 = jnp.float32
    bf16 = jnp.bfloat16

    def mm(a, b):  # single-pass bf16 MXU matmul with f32 accumulation
        return jnp.dot(a, b, preferred_element_type=f32)

    # Column (width) bilinear interpolation on the MXU.  The row (height)
    # interpolation and conv1 are already folded into a2_ref in the wrapper.
    xc = mm(x_ref[...], mcol_ref[...]).astype(bf16)            # (C*H, BPG*W2)

    # Channel-concat with the skip path along sublanes (16-row aligned in
    # bf16); conv2's structured weights were concatenated along K to match.
    cat = jnp.concatenate([xc, skip_ref[...]], axis=0)         # (C*H+C2*H2, BPG*W2)

    # Fused conv1+conv2 (+ skip branch): per horizontal tap, one structured
    # weight matmul and one shifted-identity selection matmul (lane shift on
    # the MXU).  Bias is a pre-broadcast full 2-D tile.
    z2 = b2_ref[...]
    for kw in range(a2_ref.shape[0]):
        z2 = z2 + mm(mm(a2_ref[kw], cat).astype(bf16), s2_ref[kw])
    z2 = jnp.maximum(z2, 0.0).astype(bf16)                     # (C2*Ho2, BPG*Wo2)

    # conv3 + ReLU; its selection matrices zero-pad the output width to a
    # multiple of 128 lanes so the final store is dense (no masked vst).
    z3 = b3_ref[...]
    for kw in range(a3_ref.shape[0]):
        z3 = z3 + mm(mm(a3_ref[kw], z2).astype(bf16), s3_ref[kw])
    out_ref[...] = jnp.maximum(z3, 0.0)                        # (C2*Ho3, BPG*WPAD)


# --------------------------------------------------------------------------
# Wrapper
# --------------------------------------------------------------------------
def expanding_block_forward(x, skip, w1, b1, w2, b2, w3, b3):
    B, C, H, W = x.shape
    C2 = C // 2
    _, Cs, Hs, Ws = skip.shape
    assert Cs == C2
    H2, W2 = 2 * H, 2 * W
    Ho1, Wo1 = H2 - 1, W2 - 1            # after conv1 (k=2)
    Ho2, Wo2 = Ho1 - 2, Wo1 - 2          # after conv2 (k=3)
    Ho3, Wo3 = Ho2 - 2, Wo2 - 2          # after conv3 (k=3)
    LANE = 128
    WPAD = ((Wo3 + LANE - 1) // LANE) * LANE

    f32, bf16 = jnp.float32, jnp.bfloat16

    # ---- chip-aware batch folding ------------------------------------------
    ncores = _tensorcores_per_chip()
    G = ncores if (ncores > 1 and B % ncores == 0) else 1   # grid steps
    BPG = B // G                                            # samples per step

    # ---- fuse conv1 into conv2 (exact, float64) -----------------------------
    w1n, w2n, w3n = (np.asarray(a, np.float64) for a in (w1, w2, w3))
    b1n, b2n, b3n = (np.asarray(a, np.float64) for a in (b1, b2, b3))
    w2a, w2b = w2n[:, :C2], w2n[:, C2:]           # conv2 split: conv1-out / skip
    k1, k2, k3 = w1n.shape[2], w2n.shape[2], w3n.shape[2]   # 2, 3, 3
    kf = k1 + k2 - 1                                        # 4

    wf = np.zeros((C2, C + C2, kf, kf), np.float64)
    for kh1 in range(k1):
        for kw1 in range(k1):
            for kh2 in range(k2):
                for kw2 in range(k2):
                    wf[:, :C, kh1 + kh2, kw1 + kw2] += np.einsum(
                        "om,mi->oi", w2a[:, :, kh2, kw2], w1n[:, :, kh1, kw1])
    # skip branch embedded as a kf x kf kernel acting on the zero-padded crop
    wf[:, C:, :k2, :k2] = w2b
    b2f = b2n + np.einsum("omhw,m->o", w2a, b1n)   # b1 folded through conv2

    # ---- structured per-tap matrices ----------------------------------------
    a2u = _conv_tap_matrices(wf[:, :C], H2)        # (kf, C2*Ho2, C*H2)
    a2s = _conv_tap_matrices(wf[:, C:], H2)        # (kf, C2*Ho2, C2*H2)
    a3 = _conv_tap_matrices(w3n, Ho2)              # (k3, C2*Ho3, C2*Ho2)

    mh = _upsample_matrix_align_corners(H, H2)     # (H2, H)
    mw = _upsample_matrix_align_corners(W, W2)     # (W2, W)
    # Fold the ROW interpolation into the x-side conv2 weights.
    # TODO(synk): at large C build this per-channel instead of via the O(C^2)
    # block-diagonal kron.
    mrow = np.kron(np.eye(C), mh)                  # (C*H2, C*H)
    a2x = a2u @ mrow                               # (kf, C2*Ho2, C*H)
    a2cat = np.concatenate([a2x, a2s], axis=2)     # (kf, C2*Ho2, C*H + C2*H2)

    # Column interpolation + per-tap lane-shift selection, block-diag over the
    # BPG samples folded into the lane dimension.
    eye_b = np.eye(BPG)
    mcol = np.kron(eye_b, mw.T)                                    # (BPG*W, BPG*W2)
    s2 = np.stack([np.kron(eye_b, np.eye(W2, Wo2, k=-kw)) for kw in range(kf)])
    s3_one = np.zeros((k3, Wo2, WPAD))
    for kw in range(k3):
        s3_one[kw, :, :Wo3] = np.eye(Wo2, Wo3, k=-kw)              # lane-dense pad
    s3 = np.stack([np.kron(eye_b, s3_one[kw]) for kw in range(k3)])

    # Pre-broadcast biases to full 2-D tiles (no in-kernel lane broadcast).
    b2b = np.broadcast_to(np.repeat(b2f, Ho2)[:, None], (C2 * Ho2, BPG * Wo2))
    b3b = np.broadcast_to(np.repeat(b3n, Ho3)[:, None], (C2 * Ho3, BPG * WPAD))

    # ---- activation layout: rows = channel*height, lanes = folded-batch*width
    def fold_lanes(t):            # (B, R, Wt) -> (G, R, BPG*Wt)
        _, R, Wt = t.shape
        return t.reshape(G, BPG, R, Wt).transpose(0, 2, 1, 3).reshape(G, R, BPG * Wt)

    x2d = fold_lanes(x.reshape(B, C * H, W)).astype(bf16)
    sh = Hs // 2 - Ho1 // 2
    sw = Ws // 2 - Wo1 // 2
    skip_c = skip[:, :, sh:sh + Ho1, sw:sw + Wo1]          # center crop (wrapper)
    skip_p = jnp.pad(skip_c, ((0, 0), (0, 0), (0, H2 - Ho1), (0, W2 - Wo1)))
    skip2d = fold_lanes(skip_p.reshape(B, C2 * H2, W2)).astype(bf16)

    mcolj = jnp.asarray(mcol, bf16)
    a2j = jnp.asarray(a2cat, bf16)
    s2j = jnp.asarray(s2, bf16)
    b2j = jnp.asarray(b2b, f32)
    a3j = jnp.asarray(a3, bf16)
    s3j = jnp.asarray(s3, bf16)
    b3j = jnp.asarray(b3b, f32)

    def rep_spec(arr):
        nd = arr.ndim
        return pl.BlockSpec(arr.shape, lambda g, _n=nd: (0,) * _n)

    out2d = pl.pallas_call(
        _expanding_block_kernel,
        out_shape=jax.ShapeDtypeStruct((G, C2 * Ho3, BPG * WPAD), f32),
        grid=(G,),
        in_specs=[
            pl.BlockSpec((pl.Squeezed(), C * H, BPG * W), lambda g: (g, 0, 0)),
            pl.BlockSpec((pl.Squeezed(), C2 * H2, BPG * W2), lambda g: (g, 0, 0)),
            rep_spec(mcolj), rep_spec(a2j), rep_spec(s2j), rep_spec(b2j),
            rep_spec(a3j), rep_spec(s3j), rep_spec(b3j),
        ],
        out_specs=pl.BlockSpec((pl.Squeezed(), C2 * Ho3, BPG * WPAD),
                               lambda g: (g, 0, 0)),
        compiler_params=pltpu.CompilerParams(
            dimension_semantics=("parallel",)),
    )(x2d, skip2d, mcolj, a2j, s2j, b2j, a3j, s3j, b3j)

    out = (out2d.reshape(G, C2 * Ho3, BPG, WPAD)
                .transpose(0, 2, 1, 3)
                .reshape(B, C2 * Ho3, WPAD)[:, :, :Wo3]     # crop lane padding
                .reshape(B, C2, Ho3, Wo3))
    return out


# --------------------------------------------------------------------------
# float64 numpy reference with identical semantics to the PyTorch module
# --------------------------------------------------------------------------
def _reference_numpy(x, skip, w1, b1, w2, b2, w3, b3):
    x = np.asarray(x, np.float64)
    skip = np.asarray(skip, np.float64)
    B, C, H, W = x.shape
    mh = _upsample_matrix_align_corners(H, 2 * H)
    mw = _upsample_matrix_align_corners(W, 2 * W)
    up = np.einsum('ph,qw,bchw->bcpq', mh, mw, x)

    def conv(inp, w, b):
        w = np.asarray(w, np.float64)
        b = np.asarray(b, np.float64)
        k = w.shape[2]
        Hi, Wi = inp.shape[2], inp.shape[3]
        Ho, Wo = Hi - k + 1, Wi - k + 1
        out = np.zeros((inp.shape[0], w.shape[0], Ho, Wo), np.float64)
        for kh in range(k):
            for kw in range(k):
                out += np.einsum('oi,bihw->bohw', w[:, :, kh, kw],
                                 inp[:, :, kh:kh + Ho, kw:kw + Wo])
        return out + b[None, :, None, None]

    y1 = conv(up, w1, b1)
    Hs, Ws = skip.shape[2], skip.shape[3]
    Ho1, Wo1 = y1.shape[2], y1.shape[3]
    sh = Hs // 2 - Ho1 // 2
    sw = Ws // 2 - Wo1 // 2
    skip_c = skip[:, :, sh:sh + Ho1, sw:sw + Wo1]
    cat = np.concatenate([y1, skip_c], axis=1)
    y2 = np.maximum(conv(cat, w2, b2), 0.0)
    y3 = np.maximum(conv(y2, w3, b3), 0.0)
    return y3


if __name__ == "__main__":
    # Small shapes consistent with the module:
    #   x:          (B, C,   H,  W)  = (2, 4, 8, 8)
    #   skip_con_x: (B, C/2, 2H, 2W) = (2, 2, 16, 16)
    B, C, H, W = 2, 4, 8, 8
    C2 = C // 2
    Hs = Ws = 2 * H

    key = jax.random.PRNGKey(0)
    keys = jax.random.split(key, 8)
    x = jax.random.normal(keys[0], (B, C, H, W), jnp.float32)
    skip = jax.random.normal(keys[1], (B, C2, Hs, Ws), jnp.float32)
    # Deterministic synthetic parameters (shapes per nn.Conv2d in __init__).
    w1 = jax.random.normal(keys[2], (C2, C, 2, 2), jnp.float32) * 0.3
    b1 = jax.random.normal(keys[3], (C2,), jnp.float32) * 0.1
    w2 = jax.random.normal(keys[4], (C2, C, 3, 3), jnp.float32) * 0.2
    b2 = jax.random.normal(keys[5], (C2,), jnp.float32) * 0.1
    w3 = jax.random.normal(keys[6], (C2, C2, 3, 3), jnp.float32) * 0.2
    b3 = jax.random.normal(keys[7], (C2,), jnp.float32) * 0.1

    out = jax.block_until_ready(
        expanding_block_forward(x, skip, w1, b1, w2, b2, w3, b3))

    ref = _reference_numpy(x, skip, w1, b1, w2, b2, w3, b3)
    assert out.shape == (B, C2, 2 * H - 5, 2 * W - 5), out.shape
    if not np.allclose(np.asarray(out), ref, rtol=3e-2, atol=3e-2):
        max_err = float(np.max(np.abs(np.asarray(out) - ref)))
        raise AssertionError(f"kernel mismatch vs reference, max abs err={max_err}")
    print("KERNEL_OK")
</pallas_src>

<mosaic_0001>
module attributes {stable_mosaic.version = 11 : i64} {
  func.func @_expanding_block_kernel(%arg0: i32, %arg1: memref<1x32x16xbf16, #tpu.memory_space<vmem>>, %arg2: memref<1x32x32xbf16, #tpu.memory_space<vmem>>, %arg3: memref<16x32xbf16, #tpu.memory_space<vmem>>, %arg4: memref<4x26x64xbf16, #tpu.memory_space<vmem>>, %arg5: memref<4x32x26xbf16, #tpu.memory_space<vmem>>, %arg6: memref<26x26xf32, #tpu.memory_space<vmem>>, %arg7: memref<3x22x26xbf16, #tpu.memory_space<vmem>>, %arg8: memref<3x26x256xbf16, #tpu.memory_space<vmem>>, %arg9: memref<22x256xf32, #tpu.memory_space<vmem>>, %arg10: memref<1x22x256xf32, #tpu.memory_space<vmem>>) attributes {dimension_semantics = [#tpu.dimension_semantics<parallel>], iteration_bounds = array<i64: 1>, scalar_prefetch = 0 : i64, scratch_operands = 0 : i64, tpu.core_type = #tpu.core_type<tc>, window_params = [{transform_indices = @transform_0, window_bounds = array<i64: 1, 32, 16>}, {transform_indices = @transform_1, window_bounds = array<i64: 1, 32, 32>}, {pipeline_mode = #tpu.pipeline_mode<synchronous>, transform_indices = @transform_2, window_bounds = array<i64: 16, 32>}, {pipeline_mode = #tpu.pipeline_mode<synchronous>, transform_indices = @transform_3, window_bounds = array<i64: 4, 26, 64>}, {pipeline_mode = #tpu.pipeline_mode<synchronous>, transform_indices = @transform_4, window_bounds = array<i64: 4, 32, 26>}, {pipeline_mode = #tpu.pipeline_mode<synchronous>, transform_indices = @transform_5, window_bounds = array<i64: 26, 26>}, {pipeline_mode = #tpu.pipeline_mode<synchronous>, transform_indices = @transform_6, window_bounds = array<i64: 3, 22, 26>}, {pipeline_mode = #tpu.pipeline_mode<synchronous>, transform_indices = @transform_7, window_bounds = array<i64: 3, 26, 256>}, {pipeline_mode = #tpu.pipeline_mode<synchronous>, transform_indices = @transform_8, window_bounds = array<i64: 22, 256>}, {transform_indices = @transform_9, window_bounds = array<i64: 1, 22, 256>}]} {
    %c0 = arith.constant 0 : index
    %c0_0 = arith.constant 0 : index
    %c0_1 = arith.constant 0 : index
    %0 = vector.load %arg1[%c0, %c0_0, %c0_1] : memref<1x32x16xbf16, #tpu.memory_space<vmem>>, vector<1x32x16xbf16>
    %1 = vector.shape_cast %0 : vector<1x32x16xbf16> to vector<32x16xbf16>
    %c0_2 = arith.constant 0 : index
    %c0_3 = arith.constant 0 : index
    %2 = vector.load %arg3[%c0_2, %c0_3] : memref<16x32xbf16, #tpu.memory_space<vmem>>, vector<16x32xbf16>
    %cst = arith.constant dense<0.000000e+00> : vector<32x32xf32>
    %3 = tpu.matmul %1, %2, %cst {dimension_numbers = #tpu.dot_dimension_numbers<[1], [0], [0], [1], [0, 0, 1, 1], [], []>} : vector<32x16xbf16>, vector<16x32xbf16>, vector<32x32xf32> -> vector<32x32xf32>
    %4 = arith.truncf %3 : vector<32x32xf32> to vector<32x32xbf16>
    %c0_4 = arith.constant 0 : index
    %c0_5 = arith.constant 0 : index
    %c0_6 = arith.constant 0 : index
    %5 = vector.load %arg2[%c0_4, %c0_5, %c0_6] : memref<1x32x32xbf16, #tpu.memory_space<vmem>>, vector<1x32x32xbf16>
    %6 = vector.shape_cast %5 : vector<1x32x32xbf16> to vector<32x32xbf16>
    %7 = tpu.concatenate %4, %6 in 0 : vector<32x32xbf16>, vector<32x32xbf16> -> vector<64x32xbf16>
    %c0_7 = arith.constant 0 : index
    %c0_8 = arith.constant 0 : index
    %8 = vector.load %arg6[%c0_7, %c0_8] : memref<26x26xf32, #tpu.memory_space<vmem>>, vector<26x26xf32>
    %c0_9 = arith.constant 0 : index
    %c0_10 = arith.constant 0 : index
    %c0_11 = arith.constant 0 : index
    %9 = vector.load %arg4[%c0_9, %c0_10, %c0_11] : memref<4x26x64xbf16, #tpu.memory_space<vmem>>, vector<1x26x64xbf16>
    %10 = vector.shape_cast %9 : vector<1x26x64xbf16> to vector<26x64xbf16>
    %cst_12 = arith.constant dense<0.000000e+00> : vector<26x32xf32>
    %11 = tpu.matmul %10, %7, %cst_12 {dimension_numbers = #tpu.dot_dimension_numbers<[1], [0], [0], [1], [0, 0, 1, 1], [], []>} : vector<26x64xbf16>, vector<64x32xbf16>, vector<26x32xf32> -> vector<26x32xf32>
    %12 = arith.truncf %11 : vector<26x32xf32> to vector<26x32xbf16>
    %c0_13 = arith.constant 0 : index
    %c0_14 = arith.constant 0 : index
    %c0_15 = arith.constant 0 : index
    %13 = vector.load %arg5[%c0_13, %c0_14, %c0_15] : memref<4x32x26xbf16, #tpu.memory_space<vmem>>, vector<1x32x26xbf16>
    %14 = vector.shape_cast %13 : vector<1x32x26xbf16> to vector<32x26xbf16>
    %cst_16 = arith.constant dense<0.000000e+00> : vector<26x26xf32>
    %15 = tpu.matmul %12, %14, %cst_16 {dimension_numbers = #tpu.dot_dimension_numbers<[1], [0], [0], [1], [0, 0, 1, 1], [], []>} : vector<26x32xbf16>, vector<32x26xbf16>, vector<26x26xf32> -> vector<26x26xf32>
    %16 = arith.addf %8, %15 : vector<26x26xf32>
    %c1 = arith.constant 1 : index
    %c0_17 = arith.constant 0 : index
    %c0_18 = arith.constant 0 : index
    %17 = vector.load %arg4[%c1, %c0_17, %c0_18] : memref<4x26x64xbf16, #tpu.memory_space<vmem>>, vector<1x26x64xbf16>
    %18 = vector.shape_cast %17 : vector<1x26x64xbf16> to vector<26x64xbf16>
    %cst_19 = arith.constant dense<0.000000e+00> : vector<26x32xf32>
    %19 = tpu.matmul %18, %7, %cst_19 {dimension_numbers = #tpu.dot_dimension_numbers<[1], [0], [0], [1], [0, 0, 1, 1], [], []>} : vector<26x64xbf16>, vector<64x32xbf16>, vector<26x32xf32> -> vector<26x32xf32>
    %20 = arith.truncf %19 : vector<26x32xf32> to vector<26x32xbf16>
    %c1_20 = arith.constant 1 : index
    %c0_21 = arith.constant 0 : index
    %c0_22 = arith.constant 0 : index
    %21 = vector.load %arg5[%c1_20, %c0_21, %c0_22] : memref<4x32x26xbf16, #tpu.memory_space<vmem>>, vector<1x32x26xbf16>
    %22 = vector.shape_cast %21 : vector<1x32x26xbf16> to vector<32x26xbf16>
    %cst_23 = arith.constant dense<0.000000e+00> : vector<26x26xf32>
    %23 = tpu.matmul %20, %22, %cst_23 {dimension_numbers = #tpu.dot_dimension_numbers<[1], [0], [0], [1], [0, 0, 1, 1], [], []>} : vector<26x32xbf16>, vector<32x26xbf16>, vector<26x26xf32> -> vector<26x26xf32>
    %24 = arith.addf %16, %23 : vector<26x26xf32>
    %c2 = arith.constant 2 : index
    %c0_24 = arith.constant 0 : index
    %c0_25 = arith.constant 0 : index
    %25 = vector.load %arg4[%c2, %c0_24, %c0_25] : memref<4x26x64xbf16, #tpu.memory_space<vmem>>, vector<1x26x64xbf16>
    %26 = vector.shape_cast %25 : vector<1x26x64xbf16> to vector<26x64xbf16>
    %cst_26 = arith.constant dense<0.000000e+00> : vector<26x32xf32>
    %27 = tpu.matmul %26, %7, %cst_26 {dimension_numbers = #tpu.dot_dimension_numbers<[1], [0], [0], [1], [0, 0, 1, 1], [], []>} : vector<26x64xbf16>, vector<64x32xbf16>, vector<26x32xf32> -> vector<26x32xf32>
    %28 = arith.truncf %27 : vector<26x32xf32> to vector<26x32xbf16>
    %c2_27 = arith.constant 2 : index
    %c0_28 = arith.constant 0 : index
    %c0_29 = arith.constant 0 : index
    %29 = vector.load %arg5[%c2_27, %c0_28, %c0_29] : memref<4x32x26xbf16, #tpu.memory_space<vmem>>, vector<1x32x26xbf16>
    %30 = vector.shape_cast %29 : vector<1x32x26xbf16> to vector<32x26xbf16>
    %cst_30 = arith.constant dense<0.000000e+00> : vector<26x26xf32>
    %31 = tpu.matmul %28, %30, %cst_30 {dimension_numbers = #tpu.dot_dimension_numbers<[1], [0], [0], [1], [0, 0, 1, 1], [], []>} : vector<26x32xbf16>, vector<32x26xbf16>, vector<26x26xf32> -> vector<26x26xf32>
    %32 = arith.addf %24, %31 : vector<26x26xf32>
    %c3 = arith.constant 3 : index
    %c0_31 = arith.constant 0 : index
    %c0_32 = arith.constant 0 : index
    %33 = vector.load %arg4[%c3, %c0_31, %c0_32] : memref<4x26x64xbf16, #tpu.memory_space<vmem>>, vector<1x26x64xbf16>
    %34 = vector.shape_cast %33 : vector<1x26x64xbf16> to vector<26x64xbf16>
    %cst_33 = arith.constant dense<0.000000e+00> : vector<26x32xf32>
    %35 = tpu.matmul %34, %7, %cst_33 {dimension_numbers = #tpu.dot_dimension_numbers<[1], [0], [0], [1], [0, 0, 1, 1], [], []>} : vector<26x64xbf16>, vector<64x32xbf16>, vector<26x32xf32> -> vector<26x32xf32>
    %36 = arith.truncf %35 : vector<26x32xf32> to vector<26x32xbf16>
    %c3_34 = arith.constant 3 : index
    %c0_35 = arith.constant 0 : index
    %c0_36 = arith.constant 0 : index
    %37 = vector.load %arg5[%c3_34, %c0_35, %c0_36] : memref<4x32x26xbf16, #tpu.memory_space<vmem>>, vector<1x32x26xbf16>
    %38 = vector.shape_cast %37 : vector<1x32x26xbf16> to vector<32x26xbf16>
    %cst_37 = arith.constant dense<0.000000e+00> : vector<26x26xf32>
    %39 = tpu.matmul %36, %38, %cst_37 {dimension_numbers = #tpu.dot_dimension_numbers<[1], [0], [0], [1], [0, 0, 1, 1], [], []>} : vector<26x32xbf16>, vector<32x26xbf16>, vector<26x26xf32> -> vector<26x26xf32>
    %40 = arith.addf %32, %39 : vector<26x26xf32>
    %cst_38 = arith.constant 0.000000e+00 : f32
    %41 = vector.broadcast %cst_38 : f32 to vector<26x26xf32>
    %42 = arith.maximumf %40, %41 : vector<26x26xf32>
    %43 = arith.truncf %42 : vector<26x26xf32> to vector<26x26xbf16>
    %c0_39 = arith.constant 0 : index
    %c0_40 = arith.constant 0 : index
    %44 = vector.load %arg9[%c0_39, %c0_40] : memref<22x256xf32, #tpu.memory_space<vmem>>, vector<22x256xf32>
    %c0_41 = arith.constant 0 : index
    %c0_42 = arith.constant 0 : index
    %c0_43 = arith.constant 0 : index
    %45 = vector.load %arg7[%c0_41, %c0_42, %c0_43] : memref<3x22x26xbf16, #tpu.memory_space<vmem>>, vector<1x22x26xbf16>
    %46 = vector.shape_cast %45 : vector<1x22x26xbf16> to vector<22x26xbf16>
    %cst_44 = arith.constant dense<0.000000e+00> : vector<22x26xf32>
    %47 = tpu.matmul %46, %43, %cst_44 {dimension_numbers = #tpu.dot_dimension_numbers<[1], [0], [0], [1], [0, 0, 1, 1], [], []>} : vector<22x26xbf16>, vector<26x26xbf16>, vector<22x26xf32> -> vector<22x26xf32>
    %48 = arith.truncf %47 : vector<22x26xf32> to vector<22x26xbf16>
    %c0_45 = arith.constant 0 : index
    %c0_46 = arith.constant 0 : index
    %c0_47 = arith.constant 0 : index
    %49 = vector.load %arg8[%c0_45, %c0_46, %c0_47] : memref<3x26x256xbf16, #tpu.memory_space<vmem>>, vector<1x26x256xbf16>
    %50 = vector.shape_cast %49 : vector<1x26x256xbf16> to vector<26x256xbf16>
    %cst_48 = arith.constant dense<0.000000e+00> : vector<22x256xf32>
    %51 = tpu.matmul %48, %50, %cst_48 {dimension_numbers = #tpu.dot_dimension_numbers<[1], [0], [0], [1], [0, 0, 1, 1], [], []>} : vector<22x26xbf16>, vector<26x256xbf16>, vector<22x256xf32> -> vector<22x256xf32>
    %52 = arith.addf %44, %51 : vector<22x256xf32>
    %c1_49 = arith.constant 1 : index
    %c0_50 = arith.constant 0 : index
    %c0_51 = arith.constant 0 : index
    %53 = vector.load %arg7[%c1_49, %c0_50, %c0_51] : memref<3x22x26xbf16, #tpu.memory_space<vmem>>, vector<1x22x26xbf16>
    %54 = vector.shape_cast %53 : vector<1x22x26xbf16> to vector<22x26xbf16>
    %cst_52 = arith.constant dense<0.000000e+00> : vector<22x26xf32>
    %55 = tpu.matmul %54, %43, %cst_52 {dimension_numbers = #tpu.dot_dimension_numbers<[1], [0], [0], [1], [0, 0, 1, 1], [], []>} : vector<22x26xbf16>, vector<26x26xbf16>, vector<22x26xf32> -> vector<22x26xf32>
    %56 = arith.truncf %55 : vector<22x26xf32> to vector<22x26xbf16>
    %c1_53 = arith.constant 1 : index
    %c0_54 = arith.constant 0 : index
    %c0_55 = arith.constant 0 : index
    %57 = vector.load %arg8[%c1_53, %c0_54, %c0_55] : memref<3x26x256xbf16, #tpu.memory_space<vmem>>, vector<1x26x256xbf16>
    %58 = vector.shape_cast %57 : vector<1x26x256xbf16> to vector<26x256xbf16>
    %cst_56 = arith.constant dense<0.000000e+00> : vector<22x256xf32>
    %59 = tpu.matmul %56, %58, %cst_56 {dimension_numbers = #tpu.dot_dimension_numbers<[1], [0], [0], [1], [0, 0, 1, 1], [], []>} : vector<22x26xbf16>, vector<26x256xbf16>, vector<22x256xf32> -> vector<22x256xf32>
    %60 = arith.addf %52, %59 : vector<22x256xf32>
    %c2_57 = arith.constant 2 : index
    %c0_58 = arith.constant 0 : index
    %c0_59 = arith.constant 0 : index
    %61 = vector.load %arg7[%c2_57, %c0_58, %c0_59] : memref<3x22x26xbf16, #tpu.memory_space<vmem>>, vector<1x22x26xbf16>
    %62 = vector.shape_cast %61 : vector<1x22x26xbf16> to vector<22x26xbf16>
    %cst_60 = arith.constant dense<0.000000e+00> : vector<22x26xf32>
    %63 = tpu.matmul %62, %43, %cst_60 {dimension_numbers = #tpu.dot_dimension_numbers<[1], [0], [0], [1], [0, 0, 1, 1], [], []>} : vector<22x26xbf16>, vector<26x26xbf16>, vector<22x26xf32> -> vector<22x26xf32>
    %64 = arith.truncf %63 : vector<22x26xf32> to vector<22x26xbf16>
    %c2_61 = arith.constant 2 : index
    %c0_62 = arith.constant 0 : index
    %c0_63 = arith.constant 0 : index
    %65 = vector.load %arg8[%c2_61, %c0_62, %c0_63] : memref<3x26x256xbf16, #tpu.memory_space<vmem>>, vector<1x26x256xbf16>
    %66 = vector.shape_cast %65 : vector<1x26x256xbf16> to vector<26x256xbf16>
    %cst_64 = arith.constant dense<0.000000e+00> : vector<22x256xf32>
    %67 = tpu.matmul %64, %66, %cst_64 {dimension_numbers = #tpu.dot_dimension_numbers<[1], [0], [0], [1], [0, 0, 1, 1], [], []>} : vector<22x26xbf16>, vector<26x256xbf16>, vector<22x256xf32> -> vector<22x256xf32>
    %68 = arith.addf %60, %67 : vector<22x256xf32>
    %cst_65 = arith.constant 0.000000e+00 : f32
    %69 = vector.broadcast %cst_65 : f32 to vector<22x256xf32>
    %70 = arith.maximumf %68, %69 : vector<22x256xf32>
    %c0_66 = arith.constant 0 : index
    %c0_67 = arith.constant 0 : index
    %c0_68 = arith.constant 0 : index
    %71 = vector.load %arg10[%c0_66, %c0_67, %c0_68] : memref<1x22x256xf32, #tpu.memory_space<vmem>>, vector<1x22x256xf32>
    %72 = vector.shape_cast %71 : vector<1x22x256xf32> to vector<22x256xf32>
    %73 = vector.shape_cast %70 : vector<22x256xf32> to vector<1x22x256xf32>
    tpu.vector_store %arg10[%c0_66, %c0_67, %c0_68], %73 {strides = array<i32>} : memref<1x22x256xf32, #tpu.memory_space<vmem>>, vector<1x22x256xf32>,
    return
  }
  func.func @transform_0(%arg0: i32) -> (i32, i32, i32) {
    %c0_i32 = arith.constant 0 : i32
    %c0_i32_0 = arith.constant 0 : i32
    %c0_i32_1 = arith.constant 0 : i32
    return %arg0, %c0_i32, %c0_i32_0 : i32, i32, i32
  }
  func.func @transform_1(%arg0: i32) -> (i32, i32, i32) {
    %c0_i32 = arith.constant 0 : i32
    %c0_i32_0 = arith.constant 0 : i32
    %c0_i32_1 = arith.constant 0 : i32
    return %arg0, %c0_i32, %c0_i32_0 : i32, i32, i32
  }
  func.func @transform_2(%arg0: i32) -> (i32, i32) {
    %c0_i32 = arith.constant 0 : i32
    %c0_i32_0 = arith.constant 0 : i32
    %c0_i32_1 = arith.constant 0 : i32
    return %c0_i32, %c0_i32_0 : i32, i32
  }
  func.func @transform_3(%arg0: i32) -> (i32, i32, i32) {
    %c0_i32 = arith.constant 0 : i32
    %c0_i32_0 = arith.constant 0 : i32
    %c0_i32_1 = arith.constant 0 : i32
    %c0_i32_2 = arith.constant 0 : i32
    return %c0_i32, %c0_i32_0, %c0_i32_1 : i32, i32, i32
  }
  func.func @transform_4(%arg0: i32) -> (i32, i32, i32) {
    %c0_i32 = arith.constant 0 : i32
    %c0_i32_0 = arith.constant 0 : i32
    %c0_i32_1 = arith.constant 0 : i32
    %c0_i32_2 = arith.constant 0 : i32
    return %c0_i32, %c0_i32_0, %c0_i32_1 : i32, i32, i32
  }
  func.func @transform_5(%arg0: i32) -> (i32, i32) {
    %c0_i32 = arith.constant 0 : i32
    %c0_i32_0 = arith.constant 0 : i32
    %c0_i32_1 = arith.constant 0 : i32
    return %c0_i32, %c0_i32_0 : i32, i32
  }
  func.func @transform_6(%arg0: i32) -> (i32, i32, i32) {
    %c0_i32 = arith.constant 0 : i32
    %c0_i32_0 = arith.constant 0 : i32
    %c0_i32_1 = arith.constant 0 : i32
    %c0_i32_2 = arith.constant 0 : i32
    return %c0_i32, %c0_i32_0, %c0_i32_1 : i32, i32, i32
  }
  func.func @transform_7(%arg0: i32) -> (i32, i32, i32) {
    %c0_i32 = arith.constant 0 : i32
    %c0_i32_0 = arith.constant 0 : i32
    %c0_i32_1 = arith.constant 0 : i32
    %c0_i32_2 = arith.constant 0 : i32
    return %c0_i32, %c0_i32_0, %c0_i32_1 : i32, i32, i32
  }
  func.func @transform_8(%arg0: i32) -> (i32, i32) {
    %c0_i32 = arith.constant 0 : i32
    %c0_i32_0 = arith.constant 0 : i32
    %c0_i32_1 = arith.constant 0 : i32
    return %c0_i32, %c0_i32_0 : i32, i32
  }
  func.func @transform_9(%arg0: i32) -> (i32, i32, i32) {
    %c0_i32 = arith.constant 0 : i32
    %c0_i32_0 = arith.constant 0 : i32
    %c0_i32_1 = arith.constant 0 : i32
    return %arg0, %c0_i32, %c0_i32_0 : i32, i32, i32
  }
}

</mosaic_0001>

<bundles_post_ra>
// kernel: tpu_custom_call.1
= control target key start
LH: loop header
LB: loop body
LE: loop exit
PB: predicated region body
PF: predicated region fallthrough
CT: control target
= control target key end

     0   :  { %14 = vsyncpa [#allocation3], 0  ;;  %s1148_s12 = smov [#allocation2]   ;;  %s1149_s14 = smov 128   ;;  %s1446_s0 = inlined_call_operand.vmem [shape: bf16[1,32,16], index: 0, kind: input, shape index: {}]   ;;  %s1447_s1 = inlined_call_operand.vmem [shape: bf16[1,32,32], index: 1, kind: input, shape index: {}]   ;;  %s1448_s2 = inlined_call_operand.vmem [shape: bf16[16,32], index: 2, kind: input, shape index: {}]   ;;  %s1449_s3 = inlined_call_operand.vmem [shape: bf16[4,26,64], index: 3, kind: input, shape index: {}]   ;;  %s1450_s4 = inlined_call_operand.vmem [shape: bf16[4,32,26], index: 4, kind: input, shape index: {}]   ;;  %s1451_s5 = inlined_call_operand.hbm [shape: f32[26,26], index: 5, kind: input, shape index: {}]   ;;  %s1452_s6 = inlined_call_operand.vmem [shape: bf16[3,22,26], index: 6, kind: input, shape index: {}]   ;;  %s1453_s7 = inlined_call_operand.vmem [shape: bf16[3,26,256], index: 7, kind: input, shape index: {}]   ;;  %s1454_s8 = inlined_call_operand.vmem [shape: f32[22,256], index: 8, kind: input, shape index: {}]   ;;  %s1455_s9 = inlined_call_operand.vmem [shape: f32[1,22,256], index: 9, kind: output, shape index: {}]  }
   0x1   :  { %s29_s11 = sshll.u32 %s1451_s5, 4  ;;  %s31_s13 = sshll.u32 %s1148_s12, 4  ;;  %s30_s11 = int_to_ptr.hbm [resolvable:$true] %s29_s11  ;;  %s32_s13 = int_to_ptr.vmem [resolvable:$true] %s31_s13 }
   0x2   :  { %s1150_s15 = smov 8  }
   0x3   :  { %37 = dma.hbm_to_vmem [thread:$0]  %s30_s11, 512, %s32_s13, [#allocation3], %s1149_s14, %s1149_s14, %s1150_s15  }
   0x4   :  { %1146 = dma.done.wait [#allocation3], 512  }
   0x5   :  { %1147 = vsyncadd [#allocation3], 4294966784  ;;  %v1082_v0 = vld [vmem:[%s1448_s2] sm:$0xff]  ;;  %v1081_v1 = vld [vmem:[%s1446_s0 + $0x8] sm:$0xff]  ;;  %vm71_vm0 = vcmask 130048   ;;  %vm147_vm1 = vcmask 523264  }
   0x6   :  { %v1080_v2 = vld [vmem:[%s1446_s0] sm:$0xff]  ;;  %1116 = vmatpush.bf16.msra.mxu3 %v1082_v0  ;;  %85 = vmatpush.bf16.msra.mxu0 %v1082_v0  ;;  %v1088_v3 = vld [vmem:[%s1450_s4 + $0x8] sm:$0xff]  ;;  %v1089_v22 = vld [vmem:[%s1449_s3 + $0x10] sm:$0xff]  ;;  %vm191_vm2 = vcmask 261120   ;;  %vm515_vm3 = vcmask 1044480   ;;  %vm508_vm4 = vcmask 211968  }
   0x7   :  { %1117 = vmatpush.bf16.msra.mxu2 %v1088_v3  ;;  %v1087_v4 = vld [vmem:[%s1450_s4] sm:$0xff]  ;;  %v1084_v5 = vld [vmem:[%s1447_s1 + $0x8] sm:$0xff]  ;;  %v914_v25 = vld [vmem:[%s1449_s3 + $0x18] sm:$0xf] }
   0x8   :  { %158 = vmatpush.bf16.msra.mxu1 %v1084_v5  ;;  %v1083_v6 = vld [vmem:[%s1447_s1] sm:$0xff]  ;;  %v890_v23 = vld [vmem:[%s1449_s3 + $0x8] sm:$0xf]  ;;  %v1086_v24 = vld [vmem:[%s1449_s3 + $0x8] sm:$0x10] }
   0x9   :  { %875 = vmatmul.msk.bf16.vlgmr.msra.gmra.mxu3 %vm71_vm0, %v1081_v1  ;;  %874 = vmatmul.msk.bf16.vlgmr.msra.gmra.mxu0 %vm71_vm0, %v1080_v2  ;;  %v1085_v21 = vld [vmem:[%s1449_s3] sm:$0xff]  ;;  %v1090_v26 = vld [vmem:[%s1449_s3 + $0x18] sm:$0x10]  ;;  %v891_v27 = vor.u32 %v1086_v24, %v890_v23  ;;  %v1091_v30 = vld [vmem:[%s1450_s4 + $0x10] sm:$0xff] }
   0xa   :  { %246 = vmatpush.bf16.msrb.mxu3 %v1084_v5  ;;  %v915_v28 = vor.u32 %v1090_v26, %v914_v25  ;;  %v1092_v29 = vld [vmem:[%s1450_s4 + $0x18] sm:$0xff]  ;;  %v1097_v31 = vld [vmem:[%s1449_s3 + $0x30] sm:$0xff]  ;;  %v1093_v47 = vld [vmem:[%s1449_s3 + $0x20] sm:$0xff] }
   0xb   :  { %1118 = vmatpush.bf16.msra.mxu2 %v1087_v4  ;;  %292 = vmatpush.bf16.msrb.mxu0 %v1092_v29  ;;  %v970_v36 = vld [vmem:[%s1449_s3 + $0x38] sm:$0xf]  ;;  %v1098_v37 = vld [vmem:[%s1449_s3 + $0x38] sm:$0x10]  ;;  %v942_v48 = vld [vmem:[%s1449_s3 + $0x28] sm:$0xf] }
   0xc   :  { %159 = vmatpush.bf16.msra.mxu1 %v1083_v6  ;;  %v971_v38 = vor.u32 %v1098_v37, %v970_v36  ;;  %v1094_v49 = vld [vmem:[%s1449_s3 + $0x28] sm:$0x10]  ;;  %v1100_v52 = vld [vmem:[%s1450_s4 + $0x38] sm:$0xff]  ;;  %v1099_v53 = vld [vmem:[%s1450_s4 + $0x30] sm:$0xff] }
   0xd   :  { %v943_v50 = vor.u32 %v1094_v49, %v942_v48  ;;  %v1096_v56 = vld [vmem:[%s1450_s4 + $0x28] sm:$0xff]  ;;  %v1095_v58 = vld [vmem:[%s1450_s4 + $0x20] sm:$0xff]  ;;  %v132_v24 = vld [vmem:[#allocation2 + $0x18] sm:$0x3] }
   0xe   :  { %247 = vmatpush.bf16.msrb.mxu3 %v1083_v6 }
   0xf   :  { %334 = vmatpush.bf16.msrb.mxu2 %v1084_v5  ;;  %293 = vmatpush.bf16.msrb.mxu0 %v1091_v30 }
  0x13   :  { %335 = vmatpush.bf16.msrb.mxu2 %v1083_v6  ;;  %468 = vmatpush.bf16.msra.mxu0 %v1100_v52 }
  0x17   :  { %469 = vmatpush.bf16.msra.mxu0 %v1099_v53  ;;  %v1101_v53 = vld [vmem:[%s1452_s6] sm:$0xff] }
  0x86   :  { %v87_v7 = vpop.f32.mrf.mxu0 }
  0x87   :  { %v97_v12 = vpack.c.bf16 %v87_v7, %v87_v7 }
  0x89   :  { %v109_v17 = vunpack.c.l.b16 %v97_v12  ;;  %v1006_v12 = vld [vmem:[%s1453_s7 + $0x18] sm:$0x10] }
  0x8c   :  { %v92_v8 = vpop.f32.mrf.mxu3 }
  0x8d   :  { %v99_v10 = vpack.c.bf16 %v92_v8, %v92_v8 }
  0x8e   :  { %v89_v9 = vpop.f32.mrf.mxu0 }
  0x8f   :  { %v98_v13 = vpack.c.bf16 %v89_v9, %v89_v9  ;;  %v111_v15 = vunpack.c.l.b16 %v99_v10 }
  0x91   :  { %v110_v18 = vunpack.c.l.b16 %v98_v13 }
  0x93   :  { %v113_v20 = vpack.c.b16 %v110_v18, %v109_v17  ;;  %v998_v17 = vld [vmem:[%s1453_s7 + $0x8] sm:$0xf0] }
  0x94   :  { %v94_v11 = vpop.f32.mrf.mxu3 }
  0x95   :  { %v100_v14 = vpack.c.bf16 %v94_v11, %v94_v11  ;;  %v1104_v11 = vld [vmem:[%s1453_s7 + $0x14] sm:$0xf] }
  0x96   :  { %v1009_v13 = vor.u32 %v1104_v11, %v1006_v12  ;;  %v1109_v12 = vld [vmem:[%s1453_s7 + $0x34] sm:$0xf] }
  0x97   :  { %v112_v16 = vunpack.c.l.b16 %v100_v14 }
  0x99   :  { %v114_v19 = vpack.c.b16 %v112_v16, %v111_v15  ;;  %v571_v15 = vsel %vm515_vm3, %v1009_v13, 0  ;;  %v1102_v16 = vld [vmem:[%s1453_s7 + $0x4] sm:$0xf]  ;;  %v1039_v13 = vld [vmem:[%s1453_s7 + $0x38] sm:$0x10] }
  0x9b   :  { %160 = vmatpush.bf16.msra.mxu1 %v114_v19  ;;  %248 = vmatpush.bf16.msrb.mxu3 %v114_v19 }
  0x9c   :  { %336 = vmatpush.bf16.msrb.mxu2 %v114_v19 }
  0x9f   :  { %161 = vmatpush.bf16.msra.mxu1 %v113_v20  ;;  %249 = vmatpush.bf16.msrb.mxu3 %v113_v20 }
  0xa0   :  { %337 = vmatpush.bf16.msrb.mxu2 %v113_v20 }
  0xa2   :  { %892 = vmatmul.msk.bf16.vlgmr.msra.gmra.mxu1 %vm147_vm1, %v1085_v21  ;;  %916 = vmatmul.msk.bf16.vlgmr.msrb.gmra.mxu3 %vm147_vm1, %v1089_v22  ;;  %v131_v22 = vld [vmem:[#allocation2 + $0x10] sm:$0xff] }
  0xa3   :  { %422 = vmatpush.bf16.msra.mxu3 %v1084_v5  ;;  %204 = vmatpush.bf16.msrb.mxu1 %v1088_v3 }
  0xa7   :  { %423 = vmatpush.bf16.msra.mxu3 %v1083_v6  ;;  %205 = vmatpush.bf16.msrb.mxu1 %v1087_v4 }
  0xab   :  { %424 = vmatpush.bf16.msra.mxu3 %v114_v19  ;;  %380 = vmatpush.bf16.msra.mxu1 %v1096_v56  ;;  %v1001_v19 = vor.u32 %v1102_v16, %v998_v17  ;;  %v1016_v56 = vld [vmem:[%s1452_s6 + $0x14] sm:$0x7]  ;;  %v1031_v16 = vld [vmem:[%s1453_s7 + $0x28] sm:$0xf0] }
  0xaf   :  { %425 = vmatpush.bf16.msra.mxu3 %v113_v20  ;;  %381 = vmatpush.bf16.msra.mxu1 %v1095_v58  ;;  %v624_v58 = vunpack.c.l.b16 %v1016_v56 }
  0xb2   :  { %893 = vmatmul.msk.bf16.gmra.mxu1 %vm147_vm1, %v891_v27  ;;  %917 = vmatmul.msk.bf16.gmra.mxu3 %vm147_vm1, %v915_v28  ;;  %v130_v27 = vld [vmem:[#allocation2 + $0x8] sm:$0xff]  ;;  %v129_v28 = vld [vmem:[#allocation2] sm:$0xff] }
  0xb3   :  { %597 = vmatpush.bf16.msrb.mxu3 %v571_v15  ;;  %v1107_v15 = vld [vmem:[%s1453_s7 + $0x24] sm:$0xf] }
  0xb7   :  { %598 = vmatpush.bf16.msrb.mxu3 %v1001_v19 }
  0xc2   :  { %972 = vmatmul.msk.bf16.vlgmr.msra.gmra.mxu3 %vm147_vm1, %v1097_v31 }
  0xd2   :  { %973 = vmatmul.msk.bf16.gmra.mxu3 %vm147_vm1, %v971_v38 }
 0x11f   :  { %v163_v32 = vpop.f32.mrf.mxu1 }
 0x125   :  { %v251_v33 = vpop.f32.mrf.mxu3 }
 0x127   :  { %v165_v34 = vpop.f32.mrf.mxu1 }
 0x128   :  { %v173_v35 = vpack.c.bf16 %v165_v34, %v163_v32 }
 0x12a   :  { %902 = vmatmul.msk.bf16.vlgmr.msrb.gmra.mxu1 %vm191_vm2, %v173_v35 }
 0x12d   :  { %v253_v39 = vpop.f32.mrf.mxu3 }
 0x12e   :  { %v261_v40 = vpack.c.bf16 %v253_v39, %v251_v33 }
 0x12f   :  { %v168_v41 = vpop.f32.mrf.mxu1 }
 0x130   :  { %930 = vmatmul.msk.bf16.vlgmr.msrb.gmra.mxu0 %vm191_vm2, %v261_v40 }
 0x135   :  { %v256_v42 = vpop.f32.mrf.mxu3 }
 0x137   :  { %v170_v43 = vpop.f32.mrf.mxu1 }
 0x138   :  { %v174_v44 = vpack.c.bf16 %v170_v43, %v168_v41 }
 0x13a   :  { %903 = vmatmul.msk.bf16.vlgmr.msra.gmra.mxu2 %vm191_vm2, %v174_v44 }
 0x13d   :  { %v258_v45 = vpop.f32.mrf.mxu3 }
 0x13e   :  { %v262_v46 = vpack.c.bf16 %v258_v45, %v256_v42 }
 0x140   :  { %931 = vmatmul.msk.bf16.gmra.mxu0 %vm191_vm2, %v262_v46 }
 0x145   :  { %v427_v51 = vpop.f32.mrf.mxu3 }
 0x14a   :  { %944 = vmatmul.msk.bf16.vlgmr.msrb.gmra.mxu2 %vm147_vm1, %v1093_v47 }
 0x14d   :  { %v429_v54 = vpop.f32.mrf.mxu3 }
 0x14e   :  { %v437_v55 = vpack.c.bf16 %v429_v54, %v427_v51  ;;  %v1106_v54 = vld [vmem:[%s1452_s6 + $0xc] sm:$0xff] }
 0x150   :  { %986 = vmatmul.msk.bf16.vlgmr.msra.gmra.mxu0 %vm191_vm2, %v437_v55  ;;  %v499_v55 = vld [vmem:[%s1452_s6 + $0x8] sm:$0x7] }
 0x155   :  { %v432_v57 = vpop.f32.mrf.mxu3 }
 0x15a   :  { %945 = vmatmul.msk.bf16.gmra.mxu2 %vm147_vm1, %v943_v50 }
 0x15d   :  { %v434_v59 = vpop.f32.mrf.mxu3 }
 0x15e   :  { %v438_v60 = vpack.c.bf16 %v434_v59, %v432_v57  ;;  %v505_v57 = vunpack.c.l.b16 %v499_v55  ;;  %v1112_v55 = vld [vmem:[%s1453_s7 + $0x44] sm:$0xf] }
 0x160   :  { %987 = vmatmul.msk.bf16.gmra.mxu0 %vm191_vm2, %v438_v60  ;;  %v507_v59 = vpack.c.b16 %v505_v57, %v505_v57  ;;  %v626_v60 = vpack.c.b16 %v624_v58, %v624_v58  ;;  %v1064_v57 = vld [vmem:[%s1453_s7 + $0x48] sm:$0xf0] }
 0x1a7   :  { %v207_v8 = vpop.f32.mrf.mxu1 }
 0x1a8   :  { %v217_v33 = vadd.f32 %v207_v8, %v129_v28  ;;  %v996_v8 = vld [vmem:[%s1453_s7] sm:$0xf] }
 0x1ad   :  { %v295_v5 = vpop.f32.mrf.mxu0 }
 0x1ae   :  { %v305_v36 = vadd.f32 %v295_v5, %v217_v33  ;;  %v1108_v5 = vld [vmem:[%s1453_s7 + $0x24] sm:$0xf0] }
 0x1af   :  { %v209_v10 = vpop.f32.mrf.mxu1 }
 0x1b0   :  { %v218_v31 = vadd.f32 %v209_v10, %v130_v27 }
 0x1b5   :  { %v297_v6 = vpop.f32.mrf.mxu0 }
 0x1b6   :  { %v306_v34 = vadd.f32 %v297_v6, %v218_v31  ;;  %v1049_v31 = vld [vmem:[%s1452_s6 + $0x20] sm:$0x7] }
 0x1bd   :  { %v212_v61 = vpop.f32.mrf.mxu2  ;;  %v300_v7 = vpop.f32.mrf.mxu0 }
 0x1be   :  { %v219_v23 = vadd.f32 %v212_v61, %v131_v22  ;;  %v1037_v61 = vld [vmem:[%s1453_s7 + $0x30] sm:$0xf] }
 0x1c0   :  { %v307_v29 = vadd.f32 %v300_v7, %v219_v23 }
 0x1c5   :  { %v214_v62 = vpop.f32.mrf.mxu2  ;;  %v302_v9 = vpop.f32.mrf.mxu0 }
 0x1c6   :  { %v220_v30 = vadd.f32 %v214_v62, %v132_v24  ;;  %v1110_v62 = vld [vmem:[%s1453_s7 + $0x34] sm:$0x10] }
 0x1c8   :  { %v308_v35 = vadd.f32 %v302_v9, %v220_v30  ;;  %v1103_v9 = vld [vmem:[%s1453_s7 + $0x4] sm:$0xf0]  ;;  %v1111_v30 = vld [vmem:[%s1452_s6 + $0x18] sm:$0xff] }
 0x1c9   :  { %v997_v10 = vor.u32 %v1103_v9, %v996_v8  ;;  %v494_v9 = vld [vmem:[%s1454_s8 + $0x18] sm:$0xff] }
 0x1cd   :  { %v339_v63 = vpop.f32.mrf.mxu2  ;;  %v471_v14 = vpop.f32.mrf.mxu0 }
 0x1d5   :  { %v341_v0 = vpop.f32.mrf.mxu2  ;;  %v473_v20 = vpop.f32.mrf.mxu0 }
 0x1d6   :  { %v349_v1 = vpack.c.bf16 %v341_v0, %v339_v63  ;;  %v1038_v63 = vor.u32 %v1110_v62, %v1037_v61  ;;  %v1004_v0 = vld [vmem:[%s1453_s7 + $0x10] sm:$0xf] }
 0x1d8   :  { %958 = vmatmul.msk.bf16.vlgmr.msra.gmra.mxu1 %vm191_vm2, %v349_v1  ;;  %v1105_v1 = vld [vmem:[%s1453_s7 + $0x14] sm:$0x10] }
 0x1dd   :  { %v344_v2 = vpop.f32.mrf.mxu2  ;;  %v476_v25 = vpop.f32.mrf.mxu0 }
 0x1e5   :  { %v346_v3 = vpop.f32.mrf.mxu2  ;;  %v478_v42 = vpop.f32.mrf.mxu0 }
 0x1e6   :  { %v350_v4 = vpack.c.bf16 %v346_v3, %v344_v2  ;;  %v683_v2 = vsel %vm515_vm3, %v1038_v63, 0  ;;  %v1005_v3 = vor.u32 %v1105_v1, %v1004_v0 }
 0x1e8   :  { %959 = vmatmul.msk.bf16.gmra.mxu1 %vm191_vm2, %v350_v4  ;;  %v1029_v4 = vld [vmem:[%s1453_s7 + $0x20] sm:$0xf]  ;;  %v568_v6 = vsel %vm515_vm3, %v1005_v3, 0 }
 0x1e9   :  { %v1030_v7 = vor.u32 %v1108_v5, %v1029_v4  ;;  %579 = vmatpush.bf16.msrb.mxu1 %v568_v6  ;;  %v492_v4 = vld [vmem:[%s1454_s8 + $0x8] sm:$0xff] }
 0x1ed   :  { %580 = vmatpush.bf16.msrb.mxu1 %v997_v10 }
 0x255   :  { %v383_v18 = vpop.f32.mrf.mxu1 }
 0x256   :  { %v393_v41 = vadd.f32 %v383_v18, %v305_v36  ;;  %v1034_v18 = vor.u32 %v1107_v15, %v1031_v16 }
 0x258   :  { %v481_v47 = vadd.f32 %v471_v14, %v393_v41  ;;  %v1042_v14 = vor.u32 %v1109_v12, %v1039_v13  ;;  %v1070_v41 = vld [vmem:[%s1453_s7 + $0x50] sm:$0xf] }
 0x25a   :  { %v485_v51 = vmax.f32 %v481_v47, 0.0  ;;  %v686_v17 = vsel %vm515_vm3, %v1042_v14, 0  ;;  %v1072_v47 = vld [vmem:[%s1453_s7 + $0x58] sm:$0x10]  ;;  %v496_v14 = vld [vmem:[%s1454_s8 + $0x28] sm:$0x3f] }
 0x25b   :  { %712 = vmatpush.bf16.msra.mxu1 %v686_v17 }
 0x25d   :  { %v385_v21 = vpop.f32.mrf.mxu1 }
 0x25e   :  { %v394_v37 = vadd.f32 %v385_v21, %v306_v34  ;;  %v491_v34 = vld [vmem:[%s1454_s8] sm:$0xff] }
 0x25f   :  { %713 = vmatpush.bf16.msra.mxu1 %v1034_v18 }
 0x260   :  { %v482_v44 = vadd.f32 %v473_v20, %v394_v37 }
 0x262   :  { %v486_v49 = vmax.f32 %v482_v44, 0.0 }
 0x264   :  { %v489_v52 = vpack.c.bf16 %v486_v49, %v485_v51 }
 0x265   :  { %v388_v26 = vpop.f32.mrf.mxu1 }
 0x266   :  { %v395_v32 = vadd.f32 %v388_v26, %v307_v29 }
 0x268   :  { %v483_v39 = vadd.f32 %v476_v25, %v395_v32  ;;  %v739_v32 = vunpack.c.l.b16 %v1049_v31 }
 0x26a   :  { %v487_v45 = vmax.f32 %v483_v39, 0.0  ;;  %v741_v33 = vpack.c.b16 %v739_v32, %v739_v32 }
 0x26d   :  { %v390_v38 = vpop.f32.mrf.mxu1 }
 0x26e   :  { %v396_v40 = vadd.f32 %v390_v38, %v308_v35 }
 0x270   :  { %v484_v43 = vadd.f32 %v478_v42, %v396_v40  ;;  %v493_v40 = vld [vmem:[%s1454_s8 + $0x10] sm:$0xff]  ;;  %v1115_v42 = vld [vmem:[%s1453_s7 + $0x54] sm:$0x10] }
 0x272   :  { %v488_v46 = vmax.f32 %v484_v43, 0.0  ;;  %v1114_v43 = vld [vmem:[%s1453_s7 + $0x54] sm:$0xf] }
 0x273   :  { %v1075_v49 = vor.u32 %v1114_v43, %v1072_v47 }
 0x274   :  { %v490_v48 = vpack.c.bf16 %v488_v46, %v487_v45  ;;  %v1071_v46 = vor.u32 %v1115_v42, %v1070_v41 }
 0x276   :  { %v517_v50 = vsel %vm515_vm3, %v490_v48, 0 }
 0x277   :  { %525 = vmatpush.bf16.msra.mxu2 %v517_v50  ;;  %639 = vmatpush.bf16.msrb.mxu0 %v517_v50 }
 0x278   :  { %754 = vmatpush.bf16.msra.mxu3 %v517_v50  ;;  %v798_v50 = vsel %vm515_vm3, %v1071_v46, 0 }
 0x27b   :  { %526 = vmatpush.bf16.msra.mxu2 %v489_v52  ;;  %640 = vmatpush.bf16.msrb.mxu0 %v489_v52 }
 0x27c   :  { %755 = vmatpush.bf16.msra.mxu3 %v489_v52  ;;  %v801_v52 = vsel %vm515_vm3, %v1075_v49, 0 }
 0x27e   :  { %992 = vmatmul.msk.bf16.vlgmr.msra.gmra.mxu2 %vm508_vm4, %v1101_v53  ;;  %1021 = vmatmul.msk.bf16.vlgmr.msrb.gmra.mxu0 %vm508_vm4, %v1106_v54  ;;  %v1062_v53 = vld [vmem:[%s1453_s7 + $0x40] sm:$0xf]  ;;  %v1113_v54 = vld [vmem:[%s1453_s7 + $0x44] sm:$0xf0] }
 0x27f   :  { %694 = vmatpush.bf16.msrb.mxu2 %v683_v2  ;;  %809 = vmatpush.bf16.msra.mxu0 %v798_v50  ;;  %v1063_v56 = vor.u32 %v1113_v54, %v1062_v53 }
 0x283   :  { %695 = vmatpush.bf16.msrb.mxu2 %v1030_v7  ;;  %810 = vmatpush.bf16.msra.mxu0 %v1063_v56 }
 0x287   :  { %827 = vmatpush.bf16.msra.mxu2 %v801_v52 }
 0x28e   :  { %993 = vmatmul.msk.bf16.gmra.mxu2 %vm508_vm4, %v507_v59  ;;  %1022 = vmatmul.msk.bf16.gmra.mxu0 %vm508_vm4, %v626_v60  ;;  %v495_v59 = vld [vmem:[%s1454_s8 + $0x20] sm:$0x3f]  ;;  %v1067_v60 = vor.u32 %v1112_v55, %v1064_v57 }
 0x290   :  { %828 = vmatpush.bf16.msra.mxu2 %v1067_v60 }
 0x2fb   :  { %v642_v11 = vpop.f32.mrf.mxu0 }
 0x301   :  { %v528_v19 = vpop.f32.mrf.mxu2 }
 0x303   :  { %v644_v20 = vpop.f32.mrf.mxu0 }
 0x304   :  { %v651_v21 = vpack.c.bf16 %v644_v20, %v642_v11 }
 0x306   :  { %1043 = vmatmul.msk.bf16.vlgmr.msrb.gmra.mxu2 %vm508_vm4, %v651_v21 }
 0x309   :  { %v530_v22 = vpop.f32.mrf.mxu2 }
 0x30a   :  { %v537_v23 = vpack.c.bf16 %v530_v22, %v528_v19 }
 0x30b   :  { %v647_v24 = vpop.f32.mrf.mxu0 }
 0x30c   :  { %1010 = vmatmul.msk.bf16.vlgmr.msrb.gmra.mxu1 %vm508_vm4, %v537_v23  ;;  %1012 = vmatmul.msk.bf16.vlgmr.msrb.gmra.mxu3 %vm508_vm4, %v537_v23  ;;  %v652_v26 = vpack.c.bf16 %v647_v24, %v647_v24 }
 0x311   :  { %v533_v25 = vpop.f32.mrf.mxu2 }
 0x312   :  { %v538_v28 = vpack.c.bf16 %v533_v25, %v533_v25 }
 0x313   :  { %v649_v27 = vpop.f32.mrf.mxu0 }
 0x316   :  { %1044 = vmatmul.msk.bf16.gmra.mxu2 %vm508_vm4, %v652_v26 }
 0x319   :  { %v535_v29 = vpop.f32.mrf.mxu2 }
 0x31c   :  { %1011 = vmatmul.msk.bf16.gmra.mxu1 %vm508_vm4, %v538_v28  ;;  %1013 = vmatmul.msk.bf16.gmra.mxu3 %vm508_vm4, %v538_v28 }
 0x32c   :  { %1045 = vmatmul.msk.bf16.vlgmr.msra.gmra.mxu1 %vm508_vm4, %v651_v21  ;;  %1054 = vmatmul.msk.bf16.vlgmr.msra.gmra.mxu3 %vm508_vm4, %v1111_v30 }
 0x33c   :  { %1046 = vmatmul.msk.bf16.gmra.mxu1 %vm508_vm4, %v652_v26  ;;  %1055 = vmatmul.msk.bf16.gmra.mxu3 %vm508_vm4, %v741_v33 }
 0x389   :  { %v582_v35 = vpop.f32.mrf.mxu1  ;;  %v697_v36 = vpop.f32.mrf.mxu2 }
 0x38a   :  { %v609_v37 = vadd.f32 %v582_v35, %v491_v34 }
 0x38c   :  { %v724_v38 = vadd.f32 %v697_v36, %v609_v37 }
 0x38f   :  { %v600_v39 = vpop.f32.mrf.mxu3 }
 0x390   :  { %v610_v6 = vadd.f32 %v600_v39, %v492_v4 }
 0x391   :  { %v584_v44 = vpop.f32.mrf.mxu1  ;;  %v699_v45 = vpop.f32.mrf.mxu2 }
 0x392   :  { %v611_v48 = vadd.f32 %v584_v44, %v493_v40 }
 0x394   :  { %v726_v51 = vadd.f32 %v699_v45, %v611_v48 }
 0x397   :  { %v602_v58 = vpop.f32.mrf.mxu3 }
 0x398   :  { %v612_v11 = vadd.f32 %v602_v58, %v494_v9 }
 0x399   :  { %v587_v61 = vpop.f32.mrf.mxu1  ;;  %v702_v62 = vpop.f32.mrf.mxu2 }
 0x39a   :  { %v613_v63 = vadd.f32 %v587_v61, %v495_v59 }
 0x39c   :  { %v728_v0 = vadd.f32 %v702_v62, %v613_v63 }
 0x39f   :  { %v605_v1 = vpop.f32.mrf.mxu3 }
 0x3a0   :  { %v614_v16 = vadd.f32 %v605_v1, %v496_v14 }
 0x3a1   :  { %v589_v2 = vpop.f32.mrf.mxu1  ;;  %v704_v3 = vpop.f32.mrf.mxu2 }
 0x3a7   :  { %v607_v5 = vpop.f32.mrf.mxu3 }
 0x3a9   :  { %v715_v7 = vpop.f32.mrf.mxu1 }
 0x3aa   :  { %v725_v8 = vadd.f32 %v715_v7, %v610_v6 }
 0x3af   :  { %v757_v10 = vpop.f32.mrf.mxu3 }
 0x3b1   :  { %v717_v12 = vpop.f32.mrf.mxu1 }
 0x3b2   :  { %v727_v13 = vadd.f32 %v717_v12, %v612_v11 }
 0x3b7   :  { %v759_v15 = vpop.f32.mrf.mxu3 }
 0x3b8   :  { %v766_v17 = vpack.c.bf16 %v759_v15, %v757_v10 }
 0x3b9   :  { %v720_v18 = vpop.f32.mrf.mxu1 }
 0x3ba   :  { %v729_v19 = vadd.f32 %v720_v18, %v614_v16  ;;  %1076 = vmatmul.msk.bf16.vlgmr.msra.gmra.mxu0 %vm508_vm4, %v766_v17  ;;  %1078 = vmatmul.msk.bf16.vlgmr.msra.gmra.mxu2 %vm508_vm4, %v766_v17 }
 0x3bf   :  { %v762_v20 = vpop.f32.mrf.mxu3 }
 0x3c0   :  { %v767_v22 = vpack.c.bf16 %v762_v20, %v762_v20 }
 0x3c1   :  { %v722_v21 = vpop.f32.mrf.mxu1 }
 0x3c7   :  { %v764_v23 = vpop.f32.mrf.mxu3 }
 0x3ca   :  { %1077 = vmatmul.msk.bf16.gmra.mxu0 %vm508_vm4, %v767_v22  ;;  %1079 = vmatmul.msk.bf16.gmra.mxu2 %vm508_vm4, %v767_v22 }
 0x437   :  { %v812_v24 = vpop.f32.mrf.mxu0 }
 0x438   :  { %v839_v25 = vadd.f32 %v812_v24, %v724_v38 }
 0x43a   :  { %v845_v26 = vmax.f32 %v839_v25, 0.0 }
 0x43c   :  { %851 = vst [vmem:[%s1455_s9] sm:$0xff] %v845_v26 }
 0x43d   :  { %v830_v27 = vpop.f32.mrf.mxu2 }
 0x43e   :  { %v840_v28 = vadd.f32 %v830_v27, %v725_v8 }
 0x43f   :  { %v814_v29 = vpop.f32.mrf.mxu0 }
 0x440   :  { %v846_v30 = vmax.f32 %v840_v28, 0.0  ;;  %v841_v31 = vadd.f32 %v814_v29, %v726_v51 }
 0x442   :  { %852 = vst [vmem:[%s1455_s9 + $0x8] sm:$0xff] %v846_v30  ;;  %v847_v32 = vmax.f32 %v841_v31, 0.0 }
 0x444   :  { %853 = vst [vmem:[%s1455_s9 + $0x10] sm:$0xff] %v847_v32 }
 0x445   :  { %v832_v33 = vpop.f32.mrf.mxu2 }
 0x446   :  { %v842_v34 = vadd.f32 %v832_v33, %v727_v13 }
 0x447   :  { %v817_v35 = vpop.f32.mrf.mxu0 }
 0x448   :  { %v848_v36 = vmax.f32 %v842_v34, 0.0  ;;  %v843_v37 = vadd.f32 %v817_v35, %v728_v0 }
 0x44a   :  { %854 = vst [vmem:[%s1455_s9 + $0x18] sm:$0xff] %v848_v36  ;;  %v849_v38 = vmax.f32 %v843_v37, 0.0 }
 0x44c   :  { %855 = vst [vmem:[%s1455_s9 + $0x20] sm:$0x3f] %v849_v38 }
 0x44d   :  { %v835_v39 = vpop.f32.mrf.mxu2 }
 0x44e   :  { %v844_v40 = vadd.f32 %v835_v39, %v729_v19 }
 0x44f   :  { %v819_v41 = vpop.f32.mrf.mxu0 }
 0x450   :  { %v850_v42 = vmax.f32 %v844_v40, 0.0 }
 0x452   :  { %856 = vst [vmem:[%s1455_s9 + $0x28] sm:$0x3f] %v850_v42 }
 0x455   :  { %v837_v43 = vpop.f32.mrf.mxu2 }
 0x456   :  { %861 = vsyncpa [#allocation3], 1 }

</bundles_post_ra>
